<compile_context>
chip_gen: v6e
topology: v6e:2x2x1
jax: 0.10.0
libtpu: 0.0.40
codegen_flags: <defaults>
</compile_context>

<pallas_src>
import functools

import numpy as np
import jax
import jax.numpy as jnp
from jax.experimental import pallas as pl
from jax.experimental.pallas import tpu as pltpu


# ---------------------------------------------------------------------------
# Tiling helpers
# ---------------------------------------------------------------------------
_MAX_ROWS_PER_BLOCK = 8192          # 8192 rows x 128 f32 lanes = 4 MiB / buffer
_MAX_TOKEN_TILE_BYTES = 4 << 20     # bound for the (tb, K, E) token output block
_VMEM_LIMIT_BYTES = 64 * 1024 * 1024  # explicit scoped-VMEM limit (<= physical on all gens)


def _round_up(x, m):
    return (x + m - 1) // m * m


def _choose_row_tile(M):
    """Pick a multiple-of-8 row tile <= _MAX_ROWS_PER_BLOCK.

    Returns (tm, M_padded).  The caller zero-pads the rows up to M_padded and
    slices the output back to M, so the pipelined, double-buffered tiled path
    is kept for EVERY M (no whole-operand-resident fallback -> no VMEM blowup
    on v7x's 64 MiB VMEM)."""
    n_tiles = pl.cdiv(M, _MAX_ROWS_PER_BLOCK)
    tm = _round_up(pl.cdiv(M, n_tiles), 8)
    return tm, _round_up(M, tm)


# ---------------------------------------------------------------------------
# Pallas kernels
# ---------------------------------------------------------------------------
def _linear(h, w_ref, b_ref):
    """One Linear layer on an f32 activation block."""
    w = w_ref[...].astype(jnp.float32)
    b = b_ref[...].astype(jnp.float32)
    k = w.shape[0]
    if k < 8:
        # Tiny contraction (e.g. the 1-/2-/3-wide keypoint vectors): unroll as
        # VPU broadcast multiply-adds instead of a heavily padded MXU matmul.
        out = b + h[:, 0:1] * w[0:1, :]
        for t in range(1, k):
            out = out + h[:, t:t + 1] * w[t:t + 1, :]
        return out
    return jnp.dot(h, w, preferred_element_type=jnp.float32) + b


def _fused_embedding_kernel(*refs, n_inputs, branch_layer_counts, n_after):
    """refs = (x_0..x_{n-1}, branch0 (w,b)*c0, branch1 (w,b)*c1, ...,
               after (w,b)*n_after, o_ref).

    The WHOLE module forward runs in this one body: per-branch Linear/ReLU
    chains, the lane-axis concat of the branch outputs, and the after-concat
    Linear/ReLU stack.  Intermediates live in vregs/VMEM — no HBM round trips
    between layers and no separate XLA concatenate op.
    # Note: bf16 MXU feeding (v6e/v7x) only pays off at much larger shapes;
    # f32 is kept so the same kernel is optimal on v5e (no bf16 VPU).
    """
    o_ref = refs[-1]
    idx = n_inputs
    any_before = any(c > 0 for c in branch_layer_counts)

    outs = []
    for j in range(n_inputs):
        h = refs[j][...].astype(jnp.float32)          # cast on load (HBM stays narrow)
        for l in range(branch_layer_counts[j]):
            w_ref, b_ref = refs[idx], refs[idx + 1]
            idx += 2
            if l > 0:
                h = jnp.maximum(h, 0.0)               # inter-layer ReLU (VPU)
            h = _linear(h, w_ref, b_ref)
        outs.append(h)

    # Lane-axis concat of branch outputs, done in-register (== Concat(dim=2)).
    h = outs[0] if len(outs) == 1 else jnp.concatenate(outs, axis=-1)

    for a in range(n_after):
        w_ref, b_ref = refs[idx], refs[idx + 1]
        idx += 2
        if a > 0 or any_before:                       # exact PyTorch Sequential order
            h = jnp.maximum(h, 0.0)
        h = _linear(h, w_ref, b_ref)

    o_ref[...] = h.astype(o_ref.dtype)


def pallas_token_embedding_mlp(xs, branch_layers, after_layers):
    """xs: list of (B, K, F_j) branch inputs.
    branch_layers: list (len == len(xs)) of per-branch [(w_t (in,out), b (1,out)), ...].
    after_layers:  [(w_t, b), ...] applied after the branch concat.
    Returns (B, K, out_dim) in the input dtype, from ONE pallas_call.
    """
    B, K = xs[0].shape[0], xs[0].shape[1]
    M = B * K
    out_dtype = xs[0].dtype

    if after_layers:
        out_dim = after_layers[-1][0].shape[1]
    else:
        out_dim = sum(bl[-1][0].shape[1] if bl else x.shape[-1]
                      for x, bl in zip(xs, branch_layers))

    tm, M_pad = _choose_row_tile(M)
    n_tiles = M_pad // tm

    operands = []
    in_specs = []
    for x in xs:
        x2d = x.reshape(M, x.shape[-1])               # no pre-cast; cast happens in-kernel
        if M_pad != M:
            x2d = jnp.pad(x2d, ((0, M_pad - M), (0, 0)))
        operands.append(x2d)
        in_specs.append(pl.BlockSpec((tm, x.shape[-1]), lambda i: (i, 0)))

    # Parameters: constant block across the row grid; single-buffered so the
    # 2*n_layers parameter buffers don't double their VMEM footprint (matters
    # on v7x's 64 MiB VMEM once embed_dim grows).
    def _param_spec(shape):
        return pl.BlockSpec(shape, lambda i: (0, 0),
                            pipeline_mode=pl.Buffered(buffer_count=1))

    all_layers = [wb for bl in branch_layers for wb in bl] + list(after_layers)
    for (w, b) in all_layers:
        operands += [w, b]
        in_specs += [_param_spec(w.shape), _param_spec(b.shape)]

    kernel = functools.partial(
        _fused_embedding_kernel,
        n_inputs=len(xs),
        branch_layer_counts=tuple(len(bl) for bl in branch_layers),
        n_after=len(after_layers),
    )

    out2d = pl.pallas_call(
        kernel,
        out_shape=jax.ShapeDtypeStruct((M_pad, out_dim), out_dtype),
        grid=(n_tiles,),
        in_specs=in_specs,
        # out_dim is typically 32-128 lanes; a lane-dense (multiple-of-128)
        # output slab only becomes the lever once M is large and the kernel is
        # store/DMA-bound — a no-op at these sizes, so not applied here.
        out_specs=pl.BlockSpec((tm, out_dim), lambda i: (i, 0)),
        compiler_params=pltpu.CompilerParams(
            # Row tiles are fully independent -> "parallel" lets v7x shard the
            # grid across its 2 TensorCores; harmless on single-TC v5e/v6e.
            dimension_semantics=("parallel",),
            vmem_limit_bytes=_VMEM_LIMIT_BYTES,
        ),
    )(*operands)

    if M_pad != M:
        out2d = out2d[:M]
    return out2d.reshape(B, K, out_dim)


def _token_broadcast_kernel(tok_ref, o_ref):
    o_ref[...] = jnp.broadcast_to(tok_ref[...], o_ref.shape)


def pallas_token_expand(token, B):
    """token: (1, K, E) -> (B, K, E)  (== token.expand(B, -1, -1)).

    Tiled over B with a constant-index input block so the output block stays
    bounded in VMEM on v7x; at small B*K*E this is a single grid step (one
    unmasked store of the whole output).
    # In a full model one would simply return jnp.broadcast_to(token, (B,K,E))
    # and let XLA fuse/elide the broadcast into the consumer; a kernel is kept
    # here because this exercise implements the forward as Pallas kernels.
    """
    _, K, E = token.shape
    row_bytes = K * E * token.dtype.itemsize
    tb = max(1, min(B, _MAX_TOKEN_TILE_BYTES // max(1, row_bytes)))
    while B % tb:
        tb -= 1
    return pl.pallas_call(
        _token_broadcast_kernel,
        out_shape=jax.ShapeDtypeStruct((B, K, E), token.dtype),
        grid=(B // tb,),
        in_specs=[pl.BlockSpec((1, K, E), lambda i: (0, 0, 0),
                               pipeline_mode=pl.Buffered(buffer_count=1))],
        out_specs=pl.BlockSpec((tb, K, E), lambda i: (i, 0, 0)),
        compiler_params=pltpu.CompilerParams(
            dimension_semantics=("parallel",)),
    )(token)


# ---------------------------------------------------------------------------
# TokenEmbedding module (parameter construction in plain JAX = glue)
# ---------------------------------------------------------------------------
def get_dict(cfg, key, default):
    return cfg.get(key, default)


class TokenEmbedding:
    LEARNABLE_TOKEN = 0
    NORM_POSE = 1
    KEYPOINT_VECTOR_WITHOUT_THICKNESS = 2
    KEYPOINT_VECTOR_WITH_THICKNESS = 3
    KEYPOINT_VECTOR_WITH_THICKNESS_AND_ANGLE = 4

    def __init__(self, num_keypoints, embed_dim, config, key):
        rt = config['representation_type']
        num_layers = get_dict(config, 'num_layers', 1)
        concat_after_layers = get_dict(config, 'concat_after_layers', 1)
        use_reduction = get_dict(config, 'use_reduction', True)
        not_reduce = get_dict(config, 'not_reduce', 0)
        self.representation_type = rt

        self._keys = list(jax.random.split(key, 128))
        self._key_idx = 0

        def next_key():
            k = self._keys[self._key_idx]
            self._key_idx += 1
            return k

        def make_linear(in_f, out_f):
            # Deterministic init (matching PyTorch Linear's uniform fan-in scale).
            k1, k2 = jax.random.split(next_key())
            limit = 1.0 / (in_f ** 0.5)
            w_t = jax.random.uniform(k1, (in_f, out_f), jnp.float32, -limit, limit)
            b = jax.random.uniform(k2, (1, out_f), jnp.float32, -limit, limit)
            return (w_t, b)

        if rt == self.LEARNABLE_TOKEN:
            self.token = 0.02 * jax.random.truncated_normal(
                next_key(), -2.0, 2.0, (1, num_keypoints, embed_dim), jnp.float32)
        elif rt == self.NORM_POSE:
            sizes = []
            reduction_factor = 2 ** (num_layers - 1) if use_reduction else 1
            sizes.append((2, embed_dim // reduction_factor))
            for i in range(1, num_layers):
                rfac = 2 ** (num_layers - i - 1) if use_reduction else 1
                rlast = 2 ** (num_layers - i) if use_reduction else 1
                sizes.append((embed_dim // rlast, embed_dim // rfac))
            self.embedding = [make_linear(a, b) for a, b in sizes]
        else:
            if rt == self.KEYPOINT_VECTOR_WITHOUT_THICKNESS:
                rf, nv = 1, 1
            elif rt == self.KEYPOINT_VECTOR_WITH_THICKNESS:
                rf, nv = 2, 2
            elif rt == self.KEYPOINT_VECTOR_WITH_THICKNESS_AND_ANGLE:
                rf, nv = 3, 3
            else:
                raise ValueError('Unknown representation type')

            if concat_after_layers > 0:
                embed_size = (embed_dim // 2 ** max(0, num_layers - 1 - not_reduce)
                              if (concat_after_layers == 1 and use_reduction) else embed_dim)
                before_sizes = [[] for _ in range(nv)]
                before_sizes[0].append(
                    (num_keypoints, embed_size - (nv - 1) * embed_size // rf))
                if nv > 1:
                    before_sizes[1].append((3, embed_size // rf))
                if nv > 2:
                    before_sizes[2].append((1, embed_size // rf))
                after_sizes = []
            else:
                embed_size = embed_dim // 2 ** (num_layers - 1)
                if rt == self.KEYPOINT_VECTOR_WITHOUT_THICKNESS:
                    start_size = num_keypoints
                elif rt == self.KEYPOINT_VECTOR_WITH_THICKNESS:
                    start_size = num_keypoints + 3
                else:
                    start_size = num_keypoints + 4
                before_sizes = []
                after_sizes = [(start_size, embed_size)]

            for i in range(1, num_layers):
                cond = (concat_after_layers == 1 and use_reduction) or concat_after_layers == 0
                embed_size = (embed_dim // 2 ** max(0, num_layers - i - 1 - not_reduce)
                              if cond else embed_dim)
                embed_size_last = (embed_dim // 2 ** max(0, num_layers - i - not_reduce)
                                   if cond else embed_dim)
                if concat_after_layers > i:
                    for j in range(nv):
                        if j == 0:
                            before_sizes[j].append(
                                (embed_size_last - (nv - 1) * embed_size_last // rf,
                                 embed_size - (nv - 1) * embed_size // rf))
                        else:
                            before_sizes[j].append(
                                (embed_size_last // rf, embed_size // rf))
                else:
                    after_sizes.append((embed_size_last, embed_size))

            self.before_concat = [[make_linear(a, b) for a, b in branch]
                                  for branch in before_sizes]
            self.after_concat = [make_linear(a, b) for a, b in after_sizes]

    def __call__(self, x=None, B=None):
        if self.representation_type == self.LEARNABLE_TOKEN:
            return pallas_token_expand(self.token, B)
        elif self.representation_type == self.NORM_POSE:
            # Whole Linear/ReLU stack in one pallas_call (single branch, no
            # before layers, after chain starts with a Linear).
            return pallas_token_embedding_mlp([x[0]], [[]], self.embedding)
        else:
            # Per-branch Linears, the Concat(dim=2) and the after-concat stack
            # all run inside the single fused kernel; no wrapper-side concat.
            xs = list(x)
            branch_layers = (self.before_concat if self.before_concat
                             else [[] for _ in xs])
            return pallas_token_embedding_mlp(xs, branch_layers, self.after_concat)


# ---------------------------------------------------------------------------
# Pure-JAX references (correctness checks only; precision=HIGHEST -> ~f32 exact)
# ---------------------------------------------------------------------------
def _ref_chain(x, layers, start_relu=False):
    h = x.astype(jnp.float32)
    for i, (w, b) in enumerate(layers):
        if i > 0 or start_relu:
            h = jnp.maximum(h, 0.0)
        h = jnp.dot(h, w, precision=jax.lax.Precision.HIGHEST) + b
    return h


def _ref_keypoint(x_list, before, after):
    if before and len(before[0]) > 0:
        outs = [_ref_chain(xi, br) for xi, br in zip(x_list, before)]
        h = jnp.concatenate(outs, axis=-1)
        pre = True
    else:
        h = jnp.concatenate(list(x_list), axis=-1) if len(x_list) > 1 else x_list[0]
        pre = False
    return _ref_chain(h, after, start_relu=pre)


# ---------------------------------------------------------------------------
# main
# ---------------------------------------------------------------------------
if __name__ == "__main__":
    key = jax.random.PRNGKey(0)
    k_param, k_x0, k_x1, k_x2, k_np, k_tok = jax.random.split(key, 6)

    B = 2
    num_keypoints = 8
    embed_dim = 32

    # --- keypoint-vector (with thickness and angle) path --------------------
    cfg_kv = {'representation_type': TokenEmbedding.KEYPOINT_VECTOR_WITH_THICKNESS_AND_ANGLE,
              'num_layers': 2, 'concat_after_layers': 1,
              'use_reduction': True, 'not_reduce': 0}
    mod_kv = TokenEmbedding(num_keypoints, embed_dim, cfg_kv, k_param)
    x_kv = [
        jax.random.normal(k_x0, (B, num_keypoints, num_keypoints), jnp.float32),
        jax.random.normal(k_x1, (B, num_keypoints, 3), jnp.float32),
        jax.random.normal(k_x2, (B, num_keypoints, 1), jnp.float32),
    ]
    out_kv = jax.block_until_ready(mod_kv(x_kv))
    assert out_kv.shape == (B, num_keypoints, embed_dim), out_kv.shape
    assert out_kv.dtype == x_kv[0].dtype
    ref_kv = _ref_keypoint(x_kv, mod_kv.before_concat, mod_kv.after_concat)
    np.testing.assert_allclose(np.asarray(out_kv), np.asarray(ref_kv),
                               rtol=1e-5, atol=1e-5)

    # --- normalized-pose path ------------------------------------------------
    cfg_np = {'representation_type': TokenEmbedding.NORM_POSE,
              'num_layers': 2, 'use_reduction': True}
    mod_np = TokenEmbedding(num_keypoints, embed_dim, cfg_np, k_param)
    x_np = [jax.random.normal(k_np, (B, num_keypoints, 2), jnp.float32)]
    out_np = jax.block_until_ready(mod_np(x_np))
    assert out_np.shape == (B, num_keypoints, embed_dim), out_np.shape
    ref_np = _ref_chain(x_np[0], mod_np.embedding)
    np.testing.assert_allclose(np.asarray(out_np), np.asarray(ref_np),
                               rtol=1e-5, atol=1e-5)

    # --- learnable-token path -------------------------------------------------
    cfg_tok = {'representation_type': TokenEmbedding.LEARNABLE_TOKEN}
    mod_tok = TokenEmbedding(num_keypoints, embed_dim, cfg_tok, k_tok)
    out_tok = jax.block_until_ready(mod_tok(B=B))
    assert out_tok.shape == (B, num_keypoints, embed_dim), out_tok.shape
    ref_tok = jnp.broadcast_to(mod_tok.token, (B, num_keypoints, embed_dim))
    np.testing.assert_allclose(np.asarray(out_tok), np.asarray(ref_tok),
                               rtol=0.0, atol=0.0)

    print("KERNEL_OK")
</pallas_src>

<mosaic_0001>
module attributes {stable_mosaic.version = 11 : i64} {
  func.func @_fused_embedding_kernel(%arg0: i32, %arg1: memref<16x8xf32, #tpu.memory_space<vmem>>, %arg2: memref<16x3xf32, #tpu.memory_space<vmem>>, %arg3: memref<16x1xf32, #tpu.memory_space<vmem>>, %arg4: memref<8x6xf32, #tpu.memory_space<vmem>>, %arg5: memref<1x6xf32, #tpu.memory_space<vmem>>, %arg6: memref<3x5xf32, #tpu.memory_space<vmem>>, %arg7: memref<1x5xf32, #tpu.memory_space<vmem>>, %arg8: memref<1x5xf32, #tpu.memory_space<vmem>>, %arg9: memref<1x5xf32, #tpu.memory_space<vmem>>, %arg10: memref<16x32xf32, #tpu.memory_space<vmem>>, %arg11: memref<1x32xf32, #tpu.memory_space<vmem>>, %arg12: memref<16x32xf32, #tpu.memory_space<vmem>>) attributes {dimension_semantics = [#tpu.dimension_semantics<parallel>], iteration_bounds = array<i64: 1>, scalar_prefetch = 0 : i64, scratch_operands = 0 : i64, tpu.core_type = #tpu.core_type<tc>, window_params = [{transform_indices = @transform_0, window_bounds = array<i64: 16, 8>}, {transform_indices = @transform_1, window_bounds = array<i64: 16, 3>}, {transform_indices = @transform_2, window_bounds = array<i64: 16, 1>}, {pipeline_mode = #tpu.pipeline_mode<synchronous>, transform_indices = @transform_3, window_bounds = array<i64: 8, 6>}, {pipeline_mode = #tpu.pipeline_mode<synchronous>, transform_indices = @transform_4, window_bounds = array<i64: 1, 6>}, {pipeline_mode = #tpu.pipeline_mode<synchronous>, transform_indices = @transform_5, window_bounds = array<i64: 3, 5>}, {pipeline_mode = #tpu.pipeline_mode<synchronous>, transform_indices = @transform_6, window_bounds = array<i64: 1, 5>}, {pipeline_mode = #tpu.pipeline_mode<synchronous>, transform_indices = @transform_7, window_bounds = array<i64: 1, 5>}, {pipeline_mode = #tpu.pipeline_mode<synchronous>, transform_indices = @transform_8, window_bounds = array<i64: 1, 5>}, {pipeline_mode = #tpu.pipeline_mode<synchronous>, transform_indices = @transform_9, window_bounds = array<i64: 16, 32>}, {pipeline_mode = #tpu.pipeline_mode<synchronous>, transform_indices = @transform_10, window_bounds = array<i64: 1, 32>}, {transform_indices = @transform_11, window_bounds = array<i64: 16, 32>}]} {
    %c0 = arith.constant 0 : index
    %c0_0 = arith.constant 0 : index
    %0 = vector.load %arg1[%c0, %c0_0] : memref<16x8xf32, #tpu.memory_space<vmem>>, vector<16x8xf32>
    %c0_1 = arith.constant 0 : index
    %c0_2 = arith.constant 0 : index
    %1 = vector.load %arg4[%c0_1, %c0_2] : memref<8x6xf32, #tpu.memory_space<vmem>>, vector<8x6xf32>
    %c0_3 = arith.constant 0 : index
    %c0_4 = arith.constant 0 : index
    %2 = vector.load %arg5[%c0_3, %c0_4] : memref<1x6xf32, #tpu.memory_space<vmem>>, vector<1x6xf32>
    %cst = arith.constant dense<0.000000e+00> : vector<16x6xf32>
    %3 = tpu.matmul %0, %1, %cst {dimension_numbers = #tpu.dot_dimension_numbers<[1], [0], [0], [1], [0, 0, 1, 1], [], []>} : vector<16x8xf32>, vector<8x6xf32>, vector<16x6xf32> -> vector<16x6xf32>
    %4 = vector.broadcast %2 : vector<1x6xf32> to vector<16x6xf32>
    %5 = arith.addf %3, %4 : vector<16x6xf32>
    %c0_5 = arith.constant 0 : index
    %c0_6 = arith.constant 0 : index
    %6 = vector.load %arg2[%c0_5, %c0_6] : memref<16x3xf32, #tpu.memory_space<vmem>>, vector<16x3xf32>
    %c0_7 = arith.constant 0 : index
    %c0_8 = arith.constant 0 : index
    %7 = vector.load %arg6[%c0_7, %c0_8] : memref<3x5xf32, #tpu.memory_space<vmem>>, vector<3x5xf32>
    %c0_9 = arith.constant 0 : index
    %c0_10 = arith.constant 0 : index
    %8 = vector.load %arg7[%c0_9, %c0_10] : memref<1x5xf32, #tpu.memory_space<vmem>>, vector<1x5xf32>
    %9 = vector.extract_strided_slice %6 {offsets = [0, 0], sizes = [16, 1], strides = [1, 1]} : vector<16x3xf32> to vector<16x1xf32>
    %10 = vector.extract_strided_slice %7 {offsets = [0, 0], sizes = [1, 5], strides = [1, 1]} : vector<3x5xf32> to vector<1x5xf32>
    %11 = vector.broadcast %9 : vector<16x1xf32> to vector<16x5xf32>
    %12 = vector.broadcast %10 : vector<1x5xf32> to vector<16x5xf32>
    %13 = arith.mulf %11, %12 : vector<16x5xf32>
    %14 = vector.broadcast %8 : vector<1x5xf32> to vector<16x5xf32>
    %15 = arith.addf %14, %13 : vector<16x5xf32>
    %16 = vector.extract_strided_slice %6 {offsets = [0, 1], sizes = [16, 1], strides = [1, 1]} : vector<16x3xf32> to vector<16x1xf32>
    %17 = vector.extract_strided_slice %7 {offsets = [1, 0], sizes = [1, 5], strides = [1, 1]} : vector<3x5xf32> to vector<1x5xf32>
    %18 = vector.broadcast %16 : vector<16x1xf32> to vector<16x5xf32>
    %19 = vector.broadcast %17 : vector<1x5xf32> to vector<16x5xf32>
    %20 = arith.mulf %18, %19 : vector<16x5xf32>
    %21 = arith.addf %15, %20 : vector<16x5xf32>
    %22 = vector.extract_strided_slice %6 {offsets = [0, 2], sizes = [16, 1], strides = [1, 1]} : vector<16x3xf32> to vector<16x1xf32>
    %23 = vector.extract_strided_slice %7 {offsets = [2, 0], sizes = [1, 5], strides = [1, 1]} : vector<3x5xf32> to vector<1x5xf32>
    %24 = vector.broadcast %22 : vector<16x1xf32> to vector<16x5xf32>
    %25 = vector.broadcast %23 : vector<1x5xf32> to vector<16x5xf32>
    %26 = arith.mulf %24, %25 : vector<16x5xf32>
    %27 = arith.addf %21, %26 : vector<16x5xf32>
    %c0_11 = arith.constant 0 : index
    %c0_12 = arith.constant 0 : index
    %28 = vector.load %arg3[%c0_11, %c0_12] : memref<16x1xf32, #tpu.memory_space<vmem>>, vector<16x1xf32>
    %c0_13 = arith.constant 0 : index
    %c0_14 = arith.constant 0 : index
    %29 = vector.load %arg8[%c0_13, %c0_14] : memref<1x5xf32, #tpu.memory_space<vmem>>, vector<1x5xf32>
    %c0_15 = arith.constant 0 : index
    %c0_16 = arith.constant 0 : index
    %30 = vector.load %arg9[%c0_15, %c0_16] : memref<1x5xf32, #tpu.memory_space<vmem>>, vector<1x5xf32>
    %31 = vector.broadcast %28 : vector<16x1xf32> to vector<16x5xf32>
    %32 = vector.broadcast %29 : vector<1x5xf32> to vector<16x5xf32>
    %33 = arith.mulf %31, %32 : vector<16x5xf32>
    %34 = vector.broadcast %30 : vector<1x5xf32> to vector<16x5xf32>
    %35 = arith.addf %34, %33 : vector<16x5xf32>
    %36 = tpu.concatenate %5, %27, %35 in 1 : vector<16x6xf32>, vector<16x5xf32>, vector<16x5xf32> -> vector<16x16xf32>
    %cst_17 = arith.constant 0.000000e+00 : f32
    %37 = vector.broadcast %cst_17 : f32 to vector<16x16xf32>
    %38 = arith.maximumf %36, %37 : vector<16x16xf32>
    %c0_18 = arith.constant 0 : index
    %c0_19 = arith.constant 0 : index
    %39 = vector.load %arg10[%c0_18, %c0_19] : memref<16x32xf32, #tpu.memory_space<vmem>>, vector<16x32xf32>
    %c0_20 = arith.constant 0 : index
    %c0_21 = arith.constant 0 : index
    %40 = vector.load %arg11[%c0_20, %c0_21] : memref<1x32xf32, #tpu.memory_space<vmem>>, vector<1x32xf32>
    %cst_22 = arith.constant dense<0.000000e+00> : vector<16x32xf32>
    %41 = tpu.matmul %38, %39, %cst_22 {dimension_numbers = #tpu.dot_dimension_numbers<[1], [0], [0], [1], [0, 0, 1, 1], [], []>} : vector<16x16xf32>, vector<16x32xf32>, vector<16x32xf32> -> vector<16x32xf32>
    %42 = vector.broadcast %40 : vector<1x32xf32> to vector<16x32xf32>
    %43 = arith.addf %41, %42 : vector<16x32xf32>
    %c0_23 = arith.constant 0 : index
    %c0_24 = arith.constant 0 : index
    %44 = vector.load %arg12[%c0_23, %c0_24] : memref<16x32xf32, #tpu.memory_space<vmem>>, vector<16x32xf32>
    tpu.vector_store %arg12[%c0_23, %c0_24], %43 {strides = array<i32>} : memref<16x32xf32, #tpu.memory_space<vmem>>, vector<16x32xf32>,
    return
  }
  func.func @transform_0(%arg0: i32) -> (i32, i32) {
    %c0_i32 = arith.constant 0 : i32
    %c0_i32_0 = arith.constant 0 : i32
    return %arg0, %c0_i32 : i32, i32
  }
  func.func @transform_1(%arg0: i32) -> (i32, i32) {
    %c0_i32 = arith.constant 0 : i32
    %c0_i32_0 = arith.constant 0 : i32
    return %arg0, %c0_i32 : i32, i32
  }
  func.func @transform_2(%arg0: i32) -> (i32, i32) {
    %c0_i32 = arith.constant 0 : i32
    %c0_i32_0 = arith.constant 0 : i32
    return %arg0, %c0_i32 : i32, i32
  }
  func.func @transform_3(%arg0: i32) -> (i32, i32) {
    %c0_i32 = arith.constant 0 : i32
    %c0_i32_0 = arith.constant 0 : i32
    %c0_i32_1 = arith.constant 0 : i32
    return %c0_i32, %c0_i32_0 : i32, i32
  }
  func.func @transform_4(%arg0: i32) -> (i32, i32) {
    %c0_i32 = arith.constant 0 : i32
    %c0_i32_0 = arith.constant 0 : i32
    %c0_i32_1 = arith.constant 0 : i32
    return %c0_i32, %c0_i32_0 : i32, i32
  }
  func.func @transform_5(%arg0: i32) -> (i32, i32) {
    %c0_i32 = arith.constant 0 : i32
    %c0_i32_0 = arith.constant 0 : i32
    %c0_i32_1 = arith.constant 0 : i32
    return %c0_i32, %c0_i32_0 : i32, i32
  }
  func.func @transform_6(%arg0: i32) -> (i32, i32) {
    %c0_i32 = arith.constant 0 : i32
    %c0_i32_0 = arith.constant 0 : i32
    %c0_i32_1 = arith.constant 0 : i32
    return %c0_i32, %c0_i32_0 : i32, i32
  }
  func.func @transform_7(%arg0: i32) -> (i32, i32) {
    %c0_i32 = arith.constant 0 : i32
    %c0_i32_0 = arith.constant 0 : i32
    %c0_i32_1 = arith.constant 0 : i32
    return %c0_i32, %c0_i32_0 : i32, i32
  }
  func.func @transform_8(%arg0: i32) -> (i32, i32) {
    %c0_i32 = arith.constant 0 : i32
    %c0_i32_0 = arith.constant 0 : i32
    %c0_i32_1 = arith.constant 0 : i32
    return %c0_i32, %c0_i32_0 : i32, i32
  }
  func.func @transform_9(%arg0: i32) -> (i32, i32) {
    %c0_i32 = arith.constant 0 : i32
    %c0_i32_0 = arith.constant 0 : i32
    %c0_i32_1 = arith.constant 0 : i32
    return %c0_i32, %c0_i32_0 : i32, i32
  }
  func.func @transform_10(%arg0: i32) -> (i32, i32) {
    %c0_i32 = arith.constant 0 : i32
    %c0_i32_0 = arith.constant 0 : i32
    %c0_i32_1 = arith.constant 0 : i32
    return %c0_i32, %c0_i32_0 : i32, i32
  }
  func.func @transform_11(%arg0: i32) -> (i32, i32) {
    %c0_i32 = arith.constant 0 : i32
    %c0_i32_0 = arith.constant 0 : i32
    return %arg0, %c0_i32 : i32, i32
  }
}

</mosaic_0001>

<bundles_post_ra>
// kernel: tpu_custom_call.1
= control target key start
LH: loop header
LB: loop body
LE: loop exit
PB: predicated region body
PF: predicated region fallthrough
CT: control target
= control target key end

     0   :  { %v419_v1 = vmov 1   ;;  %v420_v2 = vmov 0   ;;  %vm49_vm0 = vcmask 64512   ;;  %s535_s0 = inlined_call_operand.vmem [shape: f32[16,8], index: 0, kind: input, shape index: {}]   ;;  %s536_s1 = inlined_call_operand.vmem [shape: f32[16,3], index: 1, kind: input, shape index: {}]   ;;  %s537_s2 = inlined_call_operand.vmem [shape: f32[16,1], index: 2, kind: input, shape index: {}]   ;;  %s538_s3 = inlined_call_operand.vmem [shape: f32[8,6], index: 3, kind: input, shape index: {}]   ;;  %s539_s4 = inlined_call_operand.vmem [shape: f32[1,6], index: 4, kind: input, shape index: {}]   ;;  %s540_s5 = inlined_call_operand.vmem [shape: f32[3,5], index: 5, kind: input, shape index: {}]   ;;  %s541_s6 = inlined_call_operand.vmem [shape: f32[1,5], index: 6, kind: input, shape index: {}]   ;;  %s542_s7 = inlined_call_operand.vmem [shape: f32[1,5], index: 7, kind: input, shape index: {}]   ;;  %s543_s8 = inlined_call_operand.vmem [shape: f32[1,5], index: 8, kind: input, shape index: {}]   ;;  %s544_s9 = inlined_call_operand.vmem [shape: f32[16,32], index: 9, kind: input, shape index: {}]   ;;  %s545_s10 = inlined_call_operand.vmem [shape: f32[1,32], index: 10, kind: input, shape index: {}]   ;;  %s546_s11 = inlined_call_operand.hbm [shape: f32[16,32], index: 11, kind: output, shape index: {}]  }
   0x1   :  { %v131_v0 = vld [vmem:[%s536_s1] sm:$0xff]  ;;  %392 = vset.pattern.permute.xlu1 %v419_v1  ;;  %391 = vset.pattern.permute.xlu0 %v420_v2  ;;  %v40_v5 = vld [vmem:[%s535_s0 + $0x8] sm:$0xff] }
   0x2   :  { %v41_v3 = vld [vmem:[%s538_s3] sm:$0xff]  ;;  %160 = vperm.xlu1 %392, %v131_v0   ;;  %137 = vperm.xlu0 %391, %v131_v0   ;;  %v132_v6 = vld [vmem:[%s536_s1 + $0x8] sm:$0xff] }
   0x3   :  { %v39_v4 = vld [vmem:[%s535_s0] sm:$0xff]  ;;  %371 = vmatprep.subr.mxu0 %v41_v3 }
   0x4   :  { %373 = vmatprep.mubr.msk.f32.mxu0 %vm49_vm0, %v39_v4 }
   0x5   :  { %16 = vsyncpa [#allocation3], 0  ;;  %372 = vmatpush3.msra.mxu0 %v41_v3  ;;  %v421_v7 = vmov 2   ;;  %v191_v8 = vld [vmem:[%s537_s2] sm:$0xff]  ;;  %v192_v9 = vld [vmem:[%s537_s2 + $0x8] sm:$0xff]  ;;  %v145_v10 = vlaneseq  ;;  %s422_s18 = smov 6  }
   0x6   :  { %374 = vmatmul.mubr.msk.f32.vlgmr.msra.gmra.mxu0 %vm49_vm0, %v40_v5  ;;  %164 = vperm.xlu1 %392, %v132_v6   ;;  %v133_v13 = vld [vmem:[%s540_s5] sm:$0x7]  ;;  %v246_v25 = vld [vmem:[%s544_s9 + $0x8] sm:$0xff]  ;;  %vm237_vm1 = vcmask 48128   ;;  %vm240_vm2 = vcmask 89088   ;;  %vm254_vm3 = vcmask 130048  }
   0x7   :  { %142 = vperm.xlu0 %391, %v132_v6   ;;  %v146_v11 = vshrl.u32 %v145_v10, 7  ;;  %v358_v21 = vld [vmem:[%s541_s6] ss:$0 sm:$0xff]  ;;  %376 = vmatprep.subr.mxu1 %v246_v25  ;;  %s424_s20 = smov [#allocation2]   ;;  %vm336_vm4 = vcmask 261120  }
   0x8   :  { %377 = vmatpush3.msra.mxu1 %v246_v25  ;;  %v245_v32 = vld [vmem:[%s544_s9] sm:$0xff]  ;;  %s423_s9 = smov 11   ;;  %s344_s21 = sshll.u32 %s424_s20, 4  ;;  %s345_s21 = int_to_ptr.vmem [resolvable:$true] %s344_s21 }
   0x9   :  { %v147_v12 = vsub.s32 0, %v146_v11  ;;  %v169_v14 = vsub.s32 1, %v146_v11  ;;  %v185_v20 = vsub.s32 2, %v146_v11  ;;  %378 = vmatprep.subr.mxu1 %v245_v32  ;;  %v359_v39 = vld [vmem:[%s542_s7] ss:$0 sm:$0xff]  ;;  %s397_s22 = scalar_lea.vmem %s345_s21, 256  ;;  %p402_p1 = scmp.lt.s32.totalorder %s345_s21, %s345_s21 }
   0xa   :  { %394 = vset.pattern.permute.xlu1 %v421_v7  ;;  %379 = vmatpush3.msra.mxu1 %v245_v32  ;;  %v360_v40 = vld [vmem:[%s543_s8] ss:$0 sm:$0xff]  ;;  %p398_p0 = scmp.ne.s32.totalorder %s345_s21, %s397_s22  ;;  %p403_p2 = scmp.lt.s32.totalorder %s397_s22, %s397_s22 }
   0xb   :  { %393 = vset.pattern.permute.xlu0 %v421_v7  ;;  %180 = vperm.xlu1 %394, %v132_v6   ;;  %v148_v15 = vrot.slane %v133_v13, %v147_v12  ;;  %v170_v18 = vrot.slane %v133_v13, %v169_v14  ;;  %v186_v28 = vrot.slane %v133_v13, %v185_v20  ;;  %v355_v49 = vld [vmem:[%s539_s4] ss:$0 sm:$0xff] }
   0xc   :  { %176 = vperm.xlu0 %393, %v131_v0   ;;  %v361_v63 = vld [vmem:[%s545_s10] ss:$0 sm:$0xff]  ;;  %p404_p3 = por %p403_p2, %p402_p1 }
   0xe   :  { %p405_p4 = pnand %p404_p3, %p398_p0 }
   0xf   :  { %395 = vset.pattern.permute.xlu1 %v420_v2 }
  0x10   :  { %396 = vset.pattern.permute.xlu0 %v420_v2  ;;  %197 = vperm.xlu1 %395, %v191_v8  }
  0x11   :  { %202 = vperm.xlu0 %396, %v192_v9  }
  0x7d   :  { %v161_v16 = vpop.permute.xlu1 %160  ;;  %v138_v17 = vpop.permute.xlu0 %137 }
  0x7e   :  { %v149_v19 = vmul.f32 %v148_v15, %v138_v17  ;;  %v171_v26 = vmul.f32 %v170_v18, %v161_v16 }
  0x80   :  { %v157_v27 = vadd.f32 %v358_v21, %v149_v19 }
  0x81   :  { %v165_v22 = vpop.permute.xlu1 %164 }
  0x82   :  { %v143_v23 = vpop.permute.xlu0 %142  ;;  %v172_v33 = vmul.f32 %v170_v18, %v165_v22  ;;  %v173_v34 = vadd.f32 %v171_v26, %v157_v27 }
  0x83   :  { %v150_v24 = vmul.f32 %v148_v15, %v143_v23 }
  0x85   :  { %v158_v29 = vadd.f32 %v358_v21, %v150_v24 }
  0x86   :  { %v181_v30 = vpop.permute.xlu1 %180 }
  0x87   :  { %v177_v31 = vpop.permute.xlu0 %176  ;;  %v174_v36 = vadd.f32 %v172_v33, %v158_v29  ;;  %v188_v37 = vmul.f32 %v186_v28, %v181_v30 }
  0x88   :  { %v187_v35 = vmul.f32 %v186_v28, %v177_v31 }
  0x89   :  { %v190_v45 = vadd.f32 %v188_v37, %v174_v36 }
  0x8a   :  { %v189_v38 = vadd.f32 %v187_v35, %v173_v34 }
  0x8b   :  { %v198_v41 = vpop.permute.xlu1 %197 }
  0x8c   :  { %223 = vrot.lane.b32.xlu1 %v189_v38, %s422_s18  ;;  %v203_v42 = vpop.permute.xlu0 %202  ;;  %v211_v43 = vmul.f32 %v359_v39, %v198_v41 }
  0x8d   :  { %v212_v44 = vmul.f32 %v359_v39, %v203_v42 }
  0x8e   :  { %v219_v46 = vadd.f32 %v360_v40, %v211_v43 }
  0x8f   :  { %v220_v47 = vadd.f32 %v360_v40, %v212_v44 }
  0x90   :  { %225 = vrot.lane.b32.xlu1 %v190_v45, %s422_s18  ;;  %231 = vrot.lane.b32.xlu0 %v219_v46, %s423_s9 }
  0x94   :  { %233 = vrot.lane.b32.xlu1 %v220_v47, %s423_s9 }
  0xc6   :  { %v375_v48 = vpop.f32.mrf.mxu0 }
  0xc7   :  { %v128_v53 = vadd.f32 %v375_v48, %v355_v49 }
  0xc8   :  { %v122_v50 = vpop.f32.mrf.mxu0 }
  0xc9   :  { %v123_v52 = vadd.f32 %v355_v49, %v122_v50 }
  0xfe   :  { %v224_v51 = vpop.permute.xlu1 %223 }
  0xff   :  { %v238_v55 = vsel %vm237_vm1, %v123_v52, %v224_v51 }
 0x102   :  { %v226_v54 = vpop.permute.xlu1 %225  ;;  %v232_v56 = vpop.permute.xlu0 %231 }
 0x103   :  { %v241_v57 = vsel %vm240_vm2, %v238_v55, %v232_v56  ;;  %v239_v59 = vsel %vm237_vm1, %v128_v53, %v226_v54 }
 0x104   :  { %v243_v58 = vmax.f32 %v241_v57, 0.0 }
 0x106   :  { %v234_v60 = vpop.permute.xlu1 %233  ;;  %380 = vmatprep.mubr.msk.f32.mxu1 %vm254_vm3, %v243_v58 }
 0x107   :  { %v242_v61 = vsel %vm240_vm2, %v239_v59, %v234_v60 }
 0x108   :  { %v244_v62 = vmax.f32 %v242_v61, 0.0 }
 0x10a   :  { %381 = vmatmul.mubr.msk.f32.vlgmr.msra.gmra.mxu1 %vm254_vm3, %v244_v62 }
 0x1ca   :  { %v382_v0 = vpop.f32.mrf.mxu1 }
 0x1cb   :  { %v333_v1 = vadd.f32 %v382_v0, %v361_v63 }
 0x1cc   :  { %v327_v2 = vpop.f32.mrf.mxu1 }
 0x1cd   :  { %338 = vst.msk [vmem:[#allocation2 + $0x8] sm:$0xff] %vm336_vm4, %v333_v1  ;;  %v328_v3 = vadd.f32 %v361_v63, %v327_v2 }
 0x1cf   :  { %337 = vst.msk [vmem:[#allocation2] sm:$0xff] %vm336_vm4, %v328_v3 }
 0x1d0   :  { %408 = shalt.err (!%p405_p4)
}
 0x1d1   :  { %s425_s23 = smov 128   ;;  %s426_s24 = smov 8  }
 0x1d2   :  { %350 = dma.vmem_to_hbm [thread:$0]  %s345_s21, 256, %s546_s11, [#allocation3], %s425_s23, %s425_s23, %s426_s24  }
 0x1d3   :  { %417 = dma.done.wait [#allocation3], 256  }
 0x1d4   :  { %418 = vsyncadd [#allocation3], 4294967040 }
 0x1d5   :  { %354 = vsyncpa [#allocation3], 1 }

</bundles_post_ra>
